<compile_context>
chip_gen: v7x
topology: tpu7x:2x2x1
jax: 0.10.0
libtpu: 0.0.40
codegen_flags: <defaults>
</compile_context>

<pallas_src>
import jax
import jax.numpy as jnp
from jax.experimental import pallas as pl
from jax.experimental.pallas import tpu as pltpu


def _round_up(n, m):
    return ((n + m - 1) // m) * m


def _mlp_kernel(x_ref, w1_ref, b1_ref, w2_ref, b2_ref, w3_ref, b3_ref, o_ref):
    """One batch tile: x_ref (TB, D); o_ref (TB//128, 128) lane-dense."""
    x = x_ref[...]                                                  # (TB, D)

    # fc1 + relu — MXU, f32 accumulation.
    h1 = jnp.dot(x, w1_ref[...], preferred_element_type=jnp.float32)
    h1 = jnp.maximum(h1 + b1_ref[...], 0.0)                         # (TB, 32) f32

    # fc2 + relu — MXU, f32 accumulation (cast h1 to the weight dtype so the
    # MXU consumes bf16 when bf16 weights are supplied; no-op for f32).
    h2 = jnp.dot(h1.astype(w2_ref.dtype), w2_ref[...],
                 preferred_element_type=jnp.float32)
    h2 = jnp.maximum(h2 + b2_ref[...], 0.0)                         # (TB, 64) f32

    # fc3 (out_features == 1): VPU broadcast-multiply + XLU row reduction
    # instead of a wasteful 1-column MXU matmul.  w3_ref is stored as (1, 64).
    z = jnp.sum(h2 * w3_ref[...], axis=-1, keepdims=True) + b3_ref[...]  # (TB, 1)
    y = jax.nn.sigmoid(z)                                           # (TB, 1) f32

    # Lane-dense store: (TB, 1) -> (TB//128, 128).  Row-major, so batch order
    # is preserved; the wrapper reshapes the output back to (B, 1).
    # (At TB<=8192 this relayout is ~64 vregs of XLU work — negligible.)
    o_ref[...] = y.reshape(o_ref.shape).astype(o_ref.dtype)


# Max rows per batch tile.  8192 keeps the lane-padded, double-buffered VMEM
# footprint (~22 MiB incl. f32 intermediates) comfortably inside every
# generation's physical VMEM (v5e/v6e 128 MiB, v7x 64 MiB) once the scoped
# limit is raised explicitly below; it is also small enough that a 2+-step
# ("parallel",) grid appears for large B (dual-TC sharding on v7x).
_TB_MAX = 8192


def _choose_tile(B):
    """Pick (TB, grid_steps). TB is a multiple of 128 (single block) or 1024
    (multi block, so the (TB//128, 128) output block keeps its sublane dim a
    multiple of 8)."""
    if B <= _TB_MAX:
        return _round_up(max(B, 1), 128), 1
    n = pl.cdiv(B, _TB_MAX)
    n = _round_up(n, 2)                       # even step count: balanced 2-TC split on v7x
    tb = _round_up(pl.cdiv(B, n), 1024)
    return tb, pl.cdiv(B, tb)


def _vmem_limit_bytes(TB, D, x_itemsize):
    """Explicit scoped-VMEM budget from the lane-padded footprint."""
    lane = lambda d: _round_up(max(d, 1), 128)
    x_blk = 2 * TB * lane(D) * x_itemsize          # double-buffered x tile
    out_blk = 2 * (TB // 128) * 128 * 4            # double-buffered output slab
    interm = 3 * TB * 128 * 4                      # h1/h2/y f32, lane-padded
    weights = 2 * 6 * 128 * 128 * 4                # generous bound, double-buffered
    budget = x_blk + out_blk + interm + weights + (2 << 20)   # + margin
    return min(budget, 48 * 1024 * 1024)           # stay under v7x physical 64 MiB


def net_forward(x, params, *, compute_dtype=None):
    """x: (B, D_in). params: dict of weights/biases in (in, out) layout.

    compute_dtype: optionally jnp.bfloat16. Only the (tiny) weights are cast;
    x is used in its stored dtype — pass x already in bf16 to halve the
    bandwidth-dominant x read (a wrapper-side cast of x would only add an
    extra HBM convert pass). Accumulation is always f32.
    """
    B, D = x.shape
    w1, b1 = params["w1"], params["b1"]
    w2, b2 = params["w2"], params["b2"]
    w3, b3 = params["w3"], params["b3"]
    w3_row = w3.reshape(1, -1)            # (1, 64) for the VPU/XLU fc3 path

    if compute_dtype is not None:
        w1 = w1.astype(compute_dtype)     # weight casts are tiny; x is NOT cast here
        w2 = w2.astype(compute_dtype)

    TB, steps = _choose_tile(B)
    grid = (steps,)

    # No jnp.pad of x: the final (or only) block may overhang B; Pallas masks
    # the DMA and the overhang rows hold undefined data.  Every op in the
    # kernel is row-wise, and those rows are sliced off below.
    out_rows = pl.cdiv(B, 128)            # lane-dense output rows actually kept

    # Weights/biases: whole-array blocks with constant index_maps -> fetched
    # once and kept VMEM-resident across the (parallel) batch grid.
    const = lambda a: pl.BlockSpec(a.shape, lambda i: (0,) * a.ndim)

    in_specs = [
        pl.BlockSpec((TB, D), lambda i: (i, 0)),       # x tile (pipelined)
        const(w1), const(b1),
        const(w2), const(b2),
        const(w3_row), const(b3),
    ]
    out_specs = pl.BlockSpec((TB // 128, 128), lambda i: (i, 0))
    out_shape = jax.ShapeDtypeStruct((out_rows, 128), jnp.float32)

    # Advisory cost estimate so XLA can overlap surrounding ops with this
    # mem-bound kernel.
    x_itemsize = jnp.dtype(x.dtype).itemsize
    weight_bytes = sum(int(a.size) * jnp.dtype(a.dtype).itemsize
                       for a in (w1, b1, w2, b2, w3_row, b3))
    cost = pl.CostEstimate(
        flops=2 * B * (D * 32 + 32 * 64 + 64),
        transcendentals=B,                                    # sigmoid exp
        bytes_accessed=B * D * x_itemsize + B * 4 + weight_bytes,
    )

    out = pl.pallas_call(
        _mlp_kernel,
        out_shape=out_shape,
        grid=grid,
        in_specs=in_specs,
        out_specs=out_specs,
        compiler_params=pltpu.CompilerParams(
            dimension_semantics=("parallel",),
            vmem_limit_bytes=_vmem_limit_bytes(TB, D, x_itemsize),
        ),
        cost_estimate=cost,
    )(x, w1, b1, w2, b2, w3_row, b3)

    # Lane-dense (out_rows, 128) slab -> (B, 1); drop trailing garbage rows.
    return out.reshape(out_rows * 128, 1)[:B]


def init_params(key, input_shape):
    """Deterministic init matching the layer shapes in Net.__init__."""
    k1, k2, k3, k4, k5, k6 = jax.random.split(key, 6)

    # Uniform(-1/sqrt(fan_in), 1/sqrt(fan_in)), like PyTorch's default Linear init.
    def lin(kw, kb, fan_in, fan_out):
        bound = 1.0 / jnp.sqrt(fan_in)
        w = jax.random.uniform(kw, (fan_in, fan_out), jnp.float32, -bound, bound)
        b = jax.random.uniform(kb, (1, fan_out), jnp.float32, -bound, bound)
        return w, b

    w1, b1 = lin(k1, k2, input_shape, 32)
    w2, b2 = lin(k3, k4, 32, 64)
    w3, b3 = lin(k5, k6, 64, 1)
    return dict(w1=w1, b1=b1, w2=w2, b2=b2, w3=w3, b3=b3)


def _reference(x, p):
    h = jnp.maximum(x.astype(jnp.float32) @ p["w1"] + p["b1"], 0.0)
    h = jnp.maximum(h @ p["w2"] + p["b2"], 0.0)
    return jax.nn.sigmoid(h @ p["w3"] + p["b3"])


if __name__ == "__main__":
    key = jax.random.PRNGKey(0)
    kx, kp = jax.random.split(key)

    B, D_IN = 8, 16                      # small synthetic batch / feature dim
    x = jax.random.normal(kx, (B, D_IN), dtype=jnp.float32)
    params = init_params(kp, D_IN)

    # Small-batch path (single 128-row block, no wrapper padding).
    out = net_forward(x, params)
    jax.block_until_ready(out)
    ref = _reference(x, params)
    assert out.shape == (B, 1)
    assert jnp.allclose(out, ref, atol=1e-5), "f32 small-batch mismatch"

    # Moderate batch: single 2560-row block (no pad, no multi-step grid).
    B2 = 2500
    x2 = jax.random.normal(kx, (B2, D_IN), dtype=jnp.float32)
    out2 = net_forward(x2, params)
    jax.block_until_ready(out2)
    ref2 = _reference(x2, params)
    assert out2.shape == (B2, 1)
    assert jnp.allclose(out2, ref2, atol=1e-5), "f32 single-block mismatch"

    # Large batch: even multi-step parallel grid with a partial final block.
    B3 = 20000
    x3 = jax.random.normal(kx, (B3, D_IN), dtype=jnp.float32)
    out3 = net_forward(x3, params)
    jax.block_until_ready(out3)
    ref3 = _reference(x3, params)
    assert out3.shape == (B3, 1)
    assert jnp.allclose(out3, ref3, atol=1e-5), "f32 multi-block mismatch"

    # bf16-at-rest path: x stored in bf16 (no wrapper convert pass), bf16 weights.
    x3_bf16 = x3.astype(jnp.bfloat16)
    out_bf16 = net_forward(x3_bf16, params, compute_dtype=jnp.bfloat16)
    jax.block_until_ready(out_bf16)
    ref_bf16 = _reference(x3_bf16, params)
    assert jnp.allclose(out_bf16, ref_bf16, atol=3e-2), "bf16 mismatch"

    print("KERNEL_OK")
</pallas_src>

<mosaic_0001>
module attributes {stable_mosaic.version = 11 : i64} {
  func.func @_mlp_kernel(%arg0: i32, %arg1: memref<128x16xf32, #tpu.memory_space<vmem>>, %arg2: memref<16x32xf32, #tpu.memory_space<vmem>>, %arg3: memref<1x32xf32, #tpu.memory_space<vmem>>, %arg4: memref<32x64xf32, #tpu.memory_space<vmem>>, %arg5: memref<1x64xf32, #tpu.memory_space<vmem>>, %arg6: memref<1x64xf32, #tpu.memory_space<vmem>>, %arg7: memref<1x1xf32, #tpu.memory_space<vmem>>, %arg8: memref<1x128xf32, #tpu.memory_space<vmem>>) attributes {dimension_semantics = [#tpu.dimension_semantics<parallel>], iteration_bounds = array<i64: 1>, scalar_prefetch = 0 : i64, scratch_operands = 0 : i64, tpu.core_type = #tpu.core_type<tc>, window_params = [{transform_indices = @transform_0, window_bounds = array<i64: 128, 16>}, {pipeline_mode = #tpu.pipeline_mode<synchronous>, transform_indices = @transform_1, window_bounds = array<i64: 16, 32>}, {pipeline_mode = #tpu.pipeline_mode<synchronous>, transform_indices = @transform_2, window_bounds = array<i64: 1, 32>}, {pipeline_mode = #tpu.pipeline_mode<synchronous>, transform_indices = @transform_3, window_bounds = array<i64: 32, 64>}, {pipeline_mode = #tpu.pipeline_mode<synchronous>, transform_indices = @transform_4, window_bounds = array<i64: 1, 64>}, {pipeline_mode = #tpu.pipeline_mode<synchronous>, transform_indices = @transform_5, window_bounds = array<i64: 1, 64>}, {pipeline_mode = #tpu.pipeline_mode<synchronous>, transform_indices = @transform_6, window_bounds = array<i64: 1, 1>}, {transform_indices = @transform_7, window_bounds = array<i64: 1, 128>}]} {
    %c0 = arith.constant 0 : index
    %c0_0 = arith.constant 0 : index
    %0 = vector.load %arg1[%c0, %c0_0] : memref<128x16xf32, #tpu.memory_space<vmem>>, vector<128x16xf32>
    %c0_1 = arith.constant 0 : index
    %c0_2 = arith.constant 0 : index
    %1 = vector.load %arg2[%c0_1, %c0_2] : memref<16x32xf32, #tpu.memory_space<vmem>>, vector<16x32xf32>
    %cst = arith.constant dense<0.000000e+00> : vector<128x32xf32>
    %2 = tpu.matmul %0, %1, %cst {dimension_numbers = #tpu.dot_dimension_numbers<[1], [0], [0], [1], [0, 0, 1, 1], [], []>} : vector<128x16xf32>, vector<16x32xf32>, vector<128x32xf32> -> vector<128x32xf32>
    %c0_3 = arith.constant 0 : index
    %c0_4 = arith.constant 0 : index
    %3 = vector.load %arg3[%c0_3, %c0_4] : memref<1x32xf32, #tpu.memory_space<vmem>>, vector<1x32xf32>
    %4 = vector.broadcast %3 : vector<1x32xf32> to vector<128x32xf32>
    %5 = arith.addf %2, %4 : vector<128x32xf32>
    %cst_5 = arith.constant 0.000000e+00 : f32
    %6 = vector.broadcast %cst_5 : f32 to vector<128x32xf32>
    %7 = arith.maximumf %5, %6 : vector<128x32xf32>
    %c0_6 = arith.constant 0 : index
    %c0_7 = arith.constant 0 : index
    %8 = vector.load %arg4[%c0_6, %c0_7] : memref<32x64xf32, #tpu.memory_space<vmem>>, vector<32x64xf32>
    %cst_8 = arith.constant dense<0.000000e+00> : vector<128x64xf32>
    %9 = tpu.matmul %7, %8, %cst_8 {dimension_numbers = #tpu.dot_dimension_numbers<[1], [0], [0], [1], [0, 0, 1, 1], [], []>} : vector<128x32xf32>, vector<32x64xf32>, vector<128x64xf32> -> vector<128x64xf32>
    %c0_9 = arith.constant 0 : index
    %c0_10 = arith.constant 0 : index
    %10 = vector.load %arg5[%c0_9, %c0_10] : memref<1x64xf32, #tpu.memory_space<vmem>>, vector<1x64xf32>
    %11 = vector.broadcast %10 : vector<1x64xf32> to vector<128x64xf32>
    %12 = arith.addf %9, %11 : vector<128x64xf32>
    %cst_11 = arith.constant 0.000000e+00 : f32
    %13 = vector.broadcast %cst_11 : f32 to vector<128x64xf32>
    %14 = arith.maximumf %12, %13 : vector<128x64xf32>
    %c0_12 = arith.constant 0 : index
    %c0_13 = arith.constant 0 : index
    %15 = vector.load %arg6[%c0_12, %c0_13] : memref<1x64xf32, #tpu.memory_space<vmem>>, vector<1x64xf32>
    %16 = vector.broadcast %15 : vector<1x64xf32> to vector<128x64xf32>
    %17 = arith.mulf %14, %16 : vector<128x64xf32>
    %cst_14 = arith.constant dense<0.000000e+00> : vector<128xf32>
    %18 = vector.multi_reduction <add>, %17, %cst_14 [1] : vector<128x64xf32> to vector<128xf32>
    %19 = vector.shape_cast %18 : vector<128xf32> to vector<128x1xf32>
    %c0_15 = arith.constant 0 : index
    %c0_16 = arith.constant 0 : index
    %20 = vector.load %arg7[%c0_15, %c0_16] : memref<1x1xf32, #tpu.memory_space<vmem>>, vector<1x1xf32>
    %21 = vector.broadcast %20 : vector<1x1xf32> to vector<128x1xf32>
    %22 = arith.addf %19, %21 : vector<128x1xf32>
    %23 = arith.negf %22 : vector<128x1xf32>
    %24 = math.exp %23 : vector<128x1xf32>
    %cst_17 = arith.constant 1.000000e+00 : f32
    %25 = vector.broadcast %cst_17 : f32 to vector<128x1xf32>
    %26 = arith.addf %25, %24 : vector<128x1xf32>
    %27 = arith.divf %25, %26 : vector<128x1xf32>
    %28 = vector.shape_cast %27 : vector<128x1xf32> to vector<1x128xf32>
    %c0_18 = arith.constant 0 : index
    %c0_19 = arith.constant 0 : index
    %29 = vector.load %arg8[%c0_18, %c0_19] : memref<1x128xf32, #tpu.memory_space<vmem>>, vector<1x128xf32>
    tpu.vector_store %arg8[%c0_18, %c0_19], %28 {strides = array<i32>} : memref<1x128xf32, #tpu.memory_space<vmem>>, vector<1x128xf32>,
    return
  }
  func.func @transform_0(%arg0: i32) -> (i32, i32) {
    %c0_i32 = arith.constant 0 : i32
    %c0_i32_0 = arith.constant 0 : i32
    return %arg0, %c0_i32 : i32, i32
  }
  func.func @transform_1(%arg0: i32) -> (i32, i32) {
    %c0_i32 = arith.constant 0 : i32
    %c0_i32_0 = arith.constant 0 : i32
    %c0_i32_1 = arith.constant 0 : i32
    return %c0_i32, %c0_i32_0 : i32, i32
  }
  func.func @transform_2(%arg0: i32) -> (i32, i32) {
    %c0_i32 = arith.constant 0 : i32
    %c0_i32_0 = arith.constant 0 : i32
    %c0_i32_1 = arith.constant 0 : i32
    return %c0_i32, %c0_i32_0 : i32, i32
  }
  func.func @transform_3(%arg0: i32) -> (i32, i32) {
    %c0_i32 = arith.constant 0 : i32
    %c0_i32_0 = arith.constant 0 : i32
    %c0_i32_1 = arith.constant 0 : i32
    return %c0_i32, %c0_i32_0 : i32, i32
  }
  func.func @transform_4(%arg0: i32) -> (i32, i32) {
    %c0_i32 = arith.constant 0 : i32
    %c0_i32_0 = arith.constant 0 : i32
    %c0_i32_1 = arith.constant 0 : i32
    return %c0_i32, %c0_i32_0 : i32, i32
  }
  func.func @transform_5(%arg0: i32) -> (i32, i32) {
    %c0_i32 = arith.constant 0 : i32
    %c0_i32_0 = arith.constant 0 : i32
    %c0_i32_1 = arith.constant 0 : i32
    return %c0_i32, %c0_i32_0 : i32, i32
  }
  func.func @transform_6(%arg0: i32) -> (i32, i32) {
    %c0_i32 = arith.constant 0 : i32
    %c0_i32_0 = arith.constant 0 : i32
    %c0_i32_1 = arith.constant 0 : i32
    return %c0_i32, %c0_i32_0 : i32, i32
  }
  func.func @transform_7(%arg0: i32) -> (i32, i32) {
    %c0_i32 = arith.constant 0 : i32
    %c0_i32_0 = arith.constant 0 : i32
    return %arg0, %c0_i32 : i32, i32
  }
}

</mosaic_0001>

<bundles_post_ra>
// kernel: tpu_custom_call.1
= control target key start
LH: loop header
LB: loop body
LE: loop exit
PB: predicated region body
PF: predicated region fallthrough
CT: control target
= control target key end

     0   :  { %s1501_s0 = inlined_call_operand.hbm [shape: f32[8,16], index: 0, kind: input, shape index: {}]   ;;  %s1502_s1 = inlined_call_operand.hbm [shape: f32[16,32], index: 1, kind: input, shape index: {}]   ;;  %s1503_s2 = inlined_call_operand.vmem [shape: f32[1,32], index: 2, kind: input, shape index: {}]   ;;  %s1504_s3 = inlined_call_operand.hbm [shape: f32[32,64], index: 3, kind: input, shape index: {}]   ;;  %s1505_s4 = inlined_call_operand.vmem [shape: f32[1,64], index: 4, kind: input, shape index: {}]   ;;  %s1506_s5 = inlined_call_operand.vmem [shape: f32[1,64], index: 5, kind: input, shape index: {}]   ;;  %s1507_s6 = inlined_call_operand.<no memory space> [shape: f32[1,1], index: 6, kind: input, shape index: {}]   ;;  %s1508_s7 = inlined_call_operand.hbm [shape: f32[1,128], index: 7, kind: output, shape index: {}]  }
   0x1   :  { %v12_v0 = vstv %s1507_s6 }
   0x2   :  { %13 = vst [vmem:[#allocation2] sm:$0x1] %v12_v0 }
   0x3   :  { %14 = vsyncpa [#allocation4], 0 }
   0x4   :  { %15 = vsyncpa [#allocation7], 0 }
   0x5   :  { %16 = vsyncpa [#allocation5], 0 }
   0x6   :  { %21 = vsyncadd [#allocation4], 1920  ;;  %s1239_s26 = smov [#allocation6]   ;;  %s1240_s28 = smov [#allocation3]  }
   0x7   :  { %s34_s27 = sshll.u32 %s1239_s26, 4  ;;  %s22_s29 = sshll.u32 %s1240_s28, 4  ;;  %s35_s27 = int_to_ptr.vmem [resolvable:$true] %s34_s27  ;;  %s1289_s29 = int_to_ptr.vmem [resolvable:$true] %s22_s29 }
   0x8   :  { %s1145_s9 = scalar_lea.hbm %s1502_s1, 256 }
   0x9   :  { %p1146_p0 = scmp.ne.s32.totalorder %s1502_s1, %s1145_s9  ;;  %p1149_p1 = scmp.lt.u32.totalorder %s1145_s9, %s1502_s1 }
   0xb   :  { %p1151_p2 = pnand %p1149_p1, %p1146_p0 }
   0xd   :  { %1154 = shalt.err (!%p1151_p2)
}
   0xe   :  { %s1155_s13 = scalar_lea.vmem %s35_s27, 256  ;;  %p1160_p4 = scmp.lt.s32.totalorder %s35_s27, %s35_s27 }
   0xf   :  { %p1156_p3 = scmp.ne.s32.totalorder %s35_s27, %s1155_s13  ;;  %p1161_p5 = scmp.lt.s32.totalorder %s1155_s13, %s1155_s13 }
  0x11   :  { %p1162_p6 = por %p1161_p5, %p1160_p4 }
  0x13   :  { %p1163_p7 = pnand %p1162_p6, %p1156_p3 }
  0x15   :  { %1166 = shalt.err (!%p1163_p7)
}
  0x16   :  { %s1241_s14 = smov 128   ;;  %s1242_s15 = smov 8  }
  0x17   :  { %40 = dma.hbm_to_vmem [thread:$0]  %s1502_s1, 256, %s35_s27, [#allocation7], %s1241_s14, %s1241_s14, %s1242_s15  }
  0x18   :  { %s1167_s20 = scalar_lea.hbm %s1501_s0, 128 }
  0x19   :  { %p1168_p8 = scmp.ne.s32.totalorder %s1501_s0, %s1167_s20  ;;  %p1171_p9 = scmp.lt.u32.totalorder %s1167_s20, %s1501_s0 }
  0x1b   :  { %p1173_p10 = pnand %p1171_p9, %p1168_p8 }
  0x1d   :  { %1176 = shalt.err (!%p1173_p10)
}
  0x1e   :  { %s1177_s25 = scalar_lea.vmem %s1289_s29, 128  ;;  %s1181_s1 = scalar_lea.vmem %s1289_s29, 2048 }
  0x1f   :  { %p1178_p11 = scmp.ne.s32.totalorder %s1289_s29, %s1177_s25  ;;  %p1182_p12 = scmp.lt.s32.totalorder %s1289_s29, %s1289_s29 }
  0x20   :  { %p1183_p13 = scmp.lt.s32.totalorder %s1181_s1, %s1177_s25 }
  0x22   :  { %p1184_p0 = por %p1183_p13, %p1182_p12 }
  0x24   :  { %p1185_p1 = pnand %p1184_p0, %p1178_p11 }
  0x26   :  { %1188 = shalt.err (!%p1185_p1)
}
  0x27   :  { %28 = dma.hbm_to_vmem [thread:$0]  %s1501_s0, 128, %s1289_s29, [#allocation4], %s1241_s14, %s1241_s14, %s1242_s15  }
  0x28   :  { %s1243_s28 = smov [#allocation8]   ;;  %s1189_s10 = scalar_lea.hbm %s1504_s3, 512 }
  0x29   :  { %s48_s30 = sshll.u32 %s1243_s28, 4  ;;  %p1190_p2 = scmp.ne.s32.totalorder %s1504_s3, %s1189_s10  ;;  %s49_s30 = int_to_ptr.vmem [resolvable:$true] %s48_s30 }
  0x2a   :  { %p1193_p3 = scmp.lt.u32.totalorder %s1189_s10, %s1504_s3 }
  0x2c   :  { %p1195_p4 = pnand %p1193_p3, %p1190_p2 }
  0x2e   :  { %1198 = shalt.err (!%p1195_p4)
}
  0x2f   :  { %s1199_s16 = scalar_lea.vmem %s49_s30, 512  ;;  %p1204_p6 = scmp.lt.s32.totalorder %s49_s30, %s49_s30 }
  0x30   :  { %p1200_p5 = scmp.ne.s32.totalorder %s49_s30, %s1199_s16  ;;  %p1205_p7 = scmp.lt.s32.totalorder %s1199_s16, %s1199_s16 }
  0x32   :  { %p1206_p8 = por %p1205_p7, %p1204_p6 }
  0x34   :  { %p1207_p9 = pnand %p1206_p8, %p1200_p5 }
  0x36   :  { %1210 = shalt.err (!%p1207_p9)
}
  0x37   :  { %54 = dma.hbm_to_vmem [thread:$0]  %s1504_s3, 512, %s49_s30, [#allocation7], %s1241_s14, %s1241_s14, %s1242_s15  }
  0x38   :  { %1233 = dma.done.wait [#allocation4], 2048  }
  0x39   :  { %1234 = vsyncadd [#allocation4], 4294965248 }
  0x3a   :  { %1235 = dma.done.wait [#allocation7], 768  }
  0x3b   :  { %1236 = vsyncadd [#allocation7], 4294966528  ;;  %vm95_vm0 = vcmask 130048   ;;  %v86_v1 = vld [vmem:[#allocation6] sm:$0xff]  ;;  %v87_v2 = vld [vmem:[#allocation6 + $0x8] sm:$0xff]  ;;  %vm316_vm1 = vcmask 261120  }
  0x3c   :  { %v70_v3 = vld [vmem:[#allocation3] sm:$0xff]  ;;  %v1060_v4 = vpack.c.bf16 %v87_v2, %v86_v1  ;;  %v71_v5 = vld [vmem:[#allocation3 + $0x8] sm:$0xff]  ;;  %v72_v6 = vld [vmem:[#allocation3 + $0x10] sm:$0xff]  ;;  %vm549_vm2 = vcmask 523264   ;;  %vm792_vm3 = vcmask 130112   ;;  %vm799_vm4 = vcmask 195712  }
  0x3d   :  { %1004 = vmatprep.mubr.msk.f32.mxu0 %vm95_vm0, %v70_v3  ;;  %v305_v7 = vld [vmem:[#allocation8] sm:$0xff]  ;;  %v306_v8 = vld [vmem:[#allocation8 + $0x8] sm:$0xff]  ;;  %v74_v11 = vld [vmem:[#allocation3 + $0x20] sm:$0xff]  ;;  %vm806_vm5 = vcmask 261312   ;;  %vm813_vm6 = vcmask 326912   ;;  %vm820_vm7 = vcmask 392512  }
  0x3e   :  { %1061 = vmatprep.subr.bf16.mxu0 %v1060_v4  ;;  %v1064_v9 = vpack.c.bf16 %v306_v8, %v305_v7  ;;  %v73_v10 = vld [vmem:[#allocation3 + $0x18] sm:$0xff]  ;;  %v75_v12 = vld [vmem:[#allocation3 + $0x28] sm:$0xff]  ;;  %v76_v13 = vld [vmem:[#allocation3 + $0x30] sm:$0xff]  ;;  %vm827_vm8 = vcmask 458112   ;;  %vm834_vm9 = vcmask 523712   ;;  %vm841_vm10 = vcmask 589312  }
  0x3f   :  { %1063 = vmatpush3.bf16.msra.mxu0 %v1060_v4  ;;  %v77_v14 = vld [vmem:[#allocation3 + $0x38] sm:$0xff]  ;;  %v78_v15 = vld [vmem:[#allocation3 + $0x40] sm:$0xff]  ;;  %v79_v16 = vld [vmem:[#allocation3 + $0x48] sm:$0xff]  ;;  %vm848_vm11 = vcmask 654912   ;;  %vm855_vm12 = vcmask 720512   ;;  %vm862_vm13 = vcmask 786112  }
  0x40   :  { %1065 = vmatprep.subr.bf16.mxu1 %v1064_v9  ;;  %v80_v17 = vld [vmem:[#allocation3 + $0x50] sm:$0xff]  ;;  %v81_v18 = vld [vmem:[#allocation3 + $0x58] sm:$0xff]  ;;  %v82_v19 = vld [vmem:[#allocation3 + $0x60] sm:$0xff]  ;;  %vm869_vm14 = vcmask 851712   ;;  %vm876_vm15 = vcmask 917312  }
  0x41   :  { %1067 = vmatpush3.bf16.msra.mxu1 %v1064_v9  ;;  %v83_v20 = vld [vmem:[#allocation3 + $0x68] sm:$0xff]  ;;  %v84_v21 = vld [vmem:[#allocation3 + $0x70] sm:$0xff]  ;;  %v85_v22 = vld [vmem:[#allocation3 + $0x78] sm:$0xff] }
  0x42   :  { %1005 = vmatmul.mubr.msk.f32.vlgmr.msra.gmra.mrb[0].mxu0 %vm95_vm0, %v71_v5  ;;  %v307_v23 = vld [vmem:[#allocation8 + $0x10] sm:$0xff]  ;;  %v308_v24 = vld [vmem:[#allocation8 + $0x18] sm:$0xff]  ;;  %v910_v26 = vld [vmem:[%s1503_s2] ss:$0 sm:$0xff] }
  0x43   :  { %1007 = vmatprep.mubr.msk.f32.mxu0 %vm95_vm0, %v72_v6  ;;  %v1068_v25 = vpack.c.bf16 %v308_v24, %v307_v23 }
  0x45   :  { %1069 = vmatprep.subr.bf16.mxu1 %v1068_v25 }
  0x46   :  { %1008 = vmatmul.mubr.msk.f32.gmra.mrb[2].mxu0 %vm95_vm0, %v73_v10  ;;  %1071 = vmatpush3.bf16.msra.mxu1 %v1068_v25 }
  0x47   :  { %1010 = vmatprep.mubr.msk.f32.mxu0 %vm95_vm0, %v74_v11  ;;  %v1380_v11 = vld [vmem:[%s1505_s4] ss:$0 sm:$0xff]  ;;  %s1245_s4 = smov [#allocation9]  }
  0x4a   :  { %1011 = vmatmul.mubr.msk.f32.gmra.mrb[4].mxu0 %vm95_vm0, %v75_v12 }
  0x4b   :  { %1013 = vmatprep.mubr.msk.f32.mxu0 %vm95_vm0, %v76_v13 }
  0x4e   :  { %1014 = vmatmul.mubr.msk.f32.gmra.mrb[6].mxu0 %vm95_vm0, %v77_v14 }
  0x4f   :  { %1016 = vmatprep.mubr.msk.f32.mxu0 %vm95_vm0, %v78_v15 }
  0x52   :  { %1017 = vmatmul.mubr.msk.f32.gmra.mrb[8].mxu0 %vm95_vm0, %v79_v16  ;;  %v1387_v16 = vld [vmem:[%s1506_s5] ss:$0 sm:$0xff]  ;;  %s900_s5 = sshll.u32 %s1245_s4, 4  ;;  %s901_s5 = int_to_ptr.vmem [resolvable:$true] %s900_s5 }
  0x53   :  { %1019 = vmatprep.mubr.msk.f32.mxu0 %vm95_vm0, %v80_v17  ;;  %s1211_s19 = scalar_lea.vmem %s901_s5, 16  ;;  %s1215_s20 = scalar_lea.vmem %s901_s5, 32 }
  0x54   :  { %p1212_p10 = scmp.ne.s32.totalorder %s901_s5, %s1211_s19  ;;  %p1216_p11 = scmp.lt.s32.totalorder %s901_s5, %s901_s5 }
  0x55   :  { %p1217_p12 = scmp.lt.s32.totalorder %s1215_s20, %s1211_s19 }
  0x56   :  { %1020 = vmatmul.mubr.msk.f32.gmra.mrb[10].mxu0 %vm95_vm0, %v81_v18 }
  0x57   :  { %1022 = vmatprep.mubr.msk.f32.mxu0 %vm95_vm0, %v82_v19  ;;  %p1218_p13 = por %p1217_p12, %p1216_p11 }
  0x59   :  { %p1219_p0 = pnand %p1218_p13, %p1212_p10 }
  0x5a   :  { %1023 = vmatmul.mubr.msk.f32.gmra.mrb[12].mxu0 %vm95_vm0, %v83_v20 }
  0x5b   :  { %1025 = vmatprep.mubr.msk.f32.mxu0 %vm95_vm0, %v84_v21 }
  0x5e   :  { %1026 = vmatmul.mubr.msk.f32.gmra.mrb[14].mxu0 %vm95_vm0, %v85_v22  ;;  %vm883_vm0 = vcmask 982912  }
 0x115   :  { %v1006_v27 = vpop.f32.mrb[0].mxu0 }
 0x116   :  { %v216_v28 = vadd.f32 %v1006_v27, %v910_v26  ;;  %v210_v29 = vpop.f32.mrb[1].mxu0 }
 0x117   :  { %v211_v30 = vadd.f32 %v910_v26, %v210_v29 }
 0x118   :  { %v290_v33 = vmax.f32 %v216_v28, 0.0 }
 0x119   :  { %v289_v31 = vmax.f32 %v211_v30, 0.0  ;;  %v1009_v32 = vpop.f32.mrb[2].mxu0 }
 0x11a   :  { %v226_v34 = vadd.f32 %v1009_v32, %v910_v26  ;;  %v220_v35 = vpop.f32.mrb[3].mxu0 }
 0x11b   :  { %v221_v36 = vadd.f32 %v910_v26, %v220_v35  ;;  %1036 = vmatprep.mubr.msk.f32.mxu1 %vm316_vm1, %v289_v31 }
 0x11c   :  { %1037 = vmatmul.mubr.msk.f32.vlgmr.msra.gmra.mrb[0].mxu1 %vm316_vm1, %v290_v33  ;;  %v292_v39 = vmax.f32 %v226_v34, 0.0 }
 0x11d   :  { %v291_v37 = vmax.f32 %v221_v36, 0.0  ;;  %v1012_v38 = vpop.f32.mrb[4].mxu0 }
 0x11e   :  { %v236_v40 = vadd.f32 %v1012_v38, %v910_v26  ;;  %v230_v41 = vpop.f32.mrb[5].mxu0 }
 0x11f   :  { %v231_v42 = vadd.f32 %v910_v26, %v230_v41  ;;  %1039 = vmatprep.mubr.msk.f32.mxu1 %vm316_vm1, %v291_v37 }
 0x120   :  { %v294_v43 = vmax.f32 %v236_v40, 0.0  ;;  %1040 = vmatmul.mubr.msk.f32.gmra.mrb[2].mxu1 %vm316_vm1, %v292_v39 }
 0x121   :  { %v293_v44 = vmax.f32 %v231_v42, 0.0  ;;  %v1015_v45 = vpop.f32.mrb[6].mxu0 }
 0x122   :  { %v246_v46 = vadd.f32 %v1015_v45, %v910_v26  ;;  %v240_v47 = vpop.f32.mrb[7].mxu0 }
 0x123   :  { %1042 = vmatprep.mubr.msk.f32.mxu1 %vm316_vm1, %v293_v44  ;;  %v241_v48 = vadd.f32 %v910_v26, %v240_v47 }
 0x124   :  { %v296_v49 = vmax.f32 %v246_v46, 0.0  ;;  %1043 = vmatmul.mubr.msk.f32.gmra.mrb[4].mxu1 %vm316_vm1, %v294_v43 }
 0x125   :  { %v295_v50 = vmax.f32 %v241_v48, 0.0  ;;  %v1018_v51 = vpop.f32.mrb[8].mxu0 }
 0x126   :  { %v256_v52 = vadd.f32 %v1018_v51, %v910_v26  ;;  %v250_v53 = vpop.f32.mrb[9].mxu0 }
 0x127   :  { %v251_v54 = vadd.f32 %v910_v26, %v250_v53  ;;  %1045 = vmatprep.mubr.msk.f32.mxu1 %vm316_vm1, %v295_v50 }
 0x128   :  { %v298_v55 = vmax.f32 %v256_v52, 0.0  ;;  %1046 = vmatmul.mubr.msk.f32.gmra.mrb[6].mxu1 %vm316_vm1, %v296_v49 }
 0x129   :  { %v297_v56 = vmax.f32 %v251_v54, 0.0  ;;  %v1021_v57 = vpop.f32.mrb[10].mxu0 }
 0x12a   :  { %v266_v58 = vadd.f32 %v1021_v57, %v910_v26  ;;  %v260_v59 = vpop.f32.mrb[11].mxu0 }
 0x12b   :  { %v261_v60 = vadd.f32 %v910_v26, %v260_v59  ;;  %1048 = vmatprep.mubr.msk.f32.mxu1 %vm316_vm1, %v297_v56 }
 0x12c   :  { %v300_v61 = vmax.f32 %v266_v58, 0.0  ;;  %1049 = vmatmul.mubr.msk.f32.gmra.mrb[8].mxu1 %vm316_vm1, %v298_v55 }
 0x12d   :  { %v299_v62 = vmax.f32 %v261_v60, 0.0  ;;  %v1024_v63 = vpop.f32.mrb[12].mxu0 }
 0x12e   :  { %v276_v0 = vadd.f32 %v1024_v63, %v910_v26  ;;  %v270_v1 = vpop.f32.mrb[13].mxu0 }
 0x12f   :  { %v271_v2 = vadd.f32 %v910_v26, %v270_v1  ;;  %1051 = vmatprep.mubr.msk.f32.mxu1 %vm316_vm1, %v299_v62 }
 0x130   :  { %v302_v3 = vmax.f32 %v276_v0, 0.0  ;;  %1052 = vmatmul.mubr.msk.f32.gmra.mrb[10].mxu1 %vm316_vm1, %v300_v61 }
 0x131   :  { %v301_v4 = vmax.f32 %v271_v2, 0.0  ;;  %v1027_v5 = vpop.f32.mrb[14].mxu0 }
 0x132   :  { %v286_v6 = vadd.f32 %v1027_v5, %v910_v26  ;;  %v280_v7 = vpop.f32.mrb[15].mxu0 }
 0x133   :  { %v281_v8 = vadd.f32 %v910_v26, %v280_v7  ;;  %1054 = vmatprep.mubr.msk.f32.mxu1 %vm316_vm1, %v301_v4 }
 0x134   :  { %v304_v9 = vmax.f32 %v286_v6, 0.0  ;;  %1055 = vmatmul.mubr.msk.f32.gmra.mrb[12].mxu1 %vm316_vm1, %v302_v3 }
 0x135   :  { %v303_v10 = vmax.f32 %v281_v8, 0.0 }
 0x137   :  { %1057 = vmatprep.mubr.msk.f32.mxu1 %vm316_vm1, %v303_v10 }
 0x138   :  { %1058 = vmatmul.mubr.msk.f32.gmra.mrb[14].mxu1 %vm316_vm1, %v304_v9  ;;  %vm890_vm1 = vcmask 1048512  }
 0x1ef   :  { %v1038_v12 = vpop.f32.mrb[0].mxu1 }
 0x1f0   :  { %v437_v13 = vadd.f32 %v1038_v12, %v1380_v11  ;;  %v431_v14 = vpop.f32.mrb[1].mxu1 }
 0x1f1   :  { %v432_v15 = vadd.f32 %v1380_v11, %v431_v14 }
 0x1f2   :  { %v511_v17 = vmax.f32 %v437_v13, 0.0 }
 0x1f3   :  { %v510_v18 = vmax.f32 %v432_v15, 0.0  ;;  %v1041_v19 = vpop.f32.mrb[2].mxu1 }
 0x1f4   :  { %v447_v20 = vadd.f32 %v1041_v19, %v1380_v11  ;;  %v441_v21 = vpop.f32.mrb[3].mxu1  ;;  %v534_v22 = vmul.f32 %v1387_v16, %v511_v17 }
 0x1f5   :  { %v442_v23 = vadd.f32 %v1380_v11, %v441_v21  ;;  %v533_v26 = vmul.f32 %v1387_v16, %v510_v18 }
 0x1f6   :  { %v513_v24 = vmax.f32 %v447_v20, 0.0  ;;  %v553_v25 = vsel %vm549_vm2, %v534_v22, 0.0 }
 0x1f7   :  { %v512_v27 = vmax.f32 %v442_v23, 0.0  ;;  %554 = vadd.xlane.f32.xlu0 %v553_v25  ;;  %v1044_v28 = vpop.f32.mrb[4].mxu1  ;;  %v550_v35 = vsel %vm549_vm2, %v533_v26, 0.0 }
 0x1f8   :  { %v457_v29 = vadd.f32 %v1044_v28, %v1380_v11  ;;  %v451_v30 = vpop.f32.mrb[5].mxu1  ;;  %v536_v31 = vmul.f32 %v1387_v16, %v513_v24 }
 0x1f9   :  { %v452_v32 = vadd.f32 %v1380_v11, %v451_v30  ;;  %v535_v36 = vmul.f32 %v1387_v16, %v512_v27 }
 0x1fa   :  { %v515_v33 = vmax.f32 %v457_v29, 0.0  ;;  %v559_v34 = vsel %vm549_vm2, %v536_v31, 0.0  ;;  %v1435_v31 = vld [vmem:[#allocation2] ss:$0 sm:$0xff] }
 0x1fb   :  { %v514_v37 = vmax.f32 %v452_v32, 0.0  ;;  %560 = vadd.xlane.f32.xlu1 %v559_v34  ;;  %551 = vadd.xlane.f32.xlu0 %v550_v35  ;;  %v1047_v38 = vpop.f32.mrb[6].mxu1  ;;  %v556_v44 = vsel %vm549_vm2, %v535_v36, 0.0 }
 0x1fc   :  { %v467_v39 = vadd.f32 %v1047_v38, %v1380_v11  ;;  %v461_v40 = vpop.f32.mrb[7].mxu1  ;;  %v538_v45 = vmul.f32 %v1387_v16, %v515_v33 }
 0x1fd   :  { %v462_v41 = vadd.f32 %v1380_v11, %v461_v40  ;;  %v537_v42 = vmul.f32 %v1387_v16, %v514_v37 }
 0x1fe   :  { %v517_v43 = vmax.f32 %v467_v39, 0.0  ;;  %v565_v55 = vsel %vm549_vm2, %v538_v45, 0.0 }
 0x1ff   :  { %557 = vadd.xlane.f32.xlu1 %v556_v44  ;;  %v516_v46 = vmax.f32 %v462_v41, 0.0  ;;  %v562_v47 = vsel %vm549_vm2, %v537_v42, 0.0  ;;  %v1050_v48 = vpop.f32.mrb[8].mxu1 }
 0x200   :  { %563 = vadd.xlane.f32.xlu0 %v562_v47  ;;  %v477_v49 = vadd.f32 %v1050_v48, %v1380_v11  ;;  %v471_v50 = vpop.f32.mrb[9].mxu1  ;;  %v540_v51 = vmul.f32 %v1387_v16, %v517_v43 }
 0x201   :  { %v472_v52 = vadd.f32 %v1380_v11, %v471_v50  ;;  %v539_v53 = vmul.f32 %v1387_v16, %v516_v46 }
 0x202   :  { %v519_v54 = vmax.f32 %v477_v49, 0.0  ;;  %v571_v60 = vsel %vm549_vm2, %v540_v51, 0.0 }
 0x203   :  { %566 = vadd.xlane.f32.xlu1 %v565_v55  ;;  %v518_v56 = vmax.f32 %v472_v52, 0.0  ;;  %v1053_v57 = vpop.f32.mrb[10].mxu1  ;;  %v568_v58 = vsel %vm549_vm2, %v539_v53, 0.0 }
 0x204   :  { %v487_v59 = vadd.f32 %v1053_v57, %v1380_v11  ;;  %569 = vadd.xlane.f32.xlu0 %v568_v58  ;;  %v481_v61 = vpop.f32.mrb[11].mxu1  ;;  %v542_v62 = vmul.f32 %v1387_v16, %v519_v54 }
 0x205   :  { %v482_v63 = vadd.f32 %v1380_v11, %v481_v61  ;;  %v541_v0 = vmul.f32 %v1387_v16, %v518_v56 }
 0x206   :  { %v521_v1 = vmax.f32 %v487_v59, 0.0  ;;  %v577_v6 = vsel %vm549_vm2, %v542_v62, 0.0 }
 0x207   :  { %572 = vadd.xlane.f32.xlu1 %v571_v60  ;;  %v520_v2 = vmax.f32 %v482_v63, 0.0  ;;  %v1056_v3 = vpop.f32.mrb[12].mxu1  ;;  %v574_v4 = vsel %vm549_vm2, %v541_v0, 0.0 }
 0x208   :  { %v497_v5 = vadd.f32 %v1056_v3, %v1380_v11  ;;  %v491_v7 = vpop.f32.mrb[13].mxu1  ;;  %v544_v8 = vmul.f32 %v1387_v16, %v521_v1  ;;  %575 = vadd.xlane.f32.xlu0 %v574_v4 }
 0x209   :  { %v492_v9 = vadd.f32 %v1380_v11, %v491_v7  ;;  %v543_v10 = vmul.f32 %v1387_v16, %v520_v2 }
 0x20a   :  { %v523_v12 = vmax.f32 %v497_v5, 0.0  ;;  %v583_v18 = vsel %vm549_vm2, %v544_v8, 0.0 }
 0x20b   :  { %578 = vadd.xlane.f32.xlu1 %v577_v6  ;;  %v522_v13 = vmax.f32 %v492_v9, 0.0  ;;  %v1059_v14 = vpop.f32.mrb[14].mxu1  ;;  %v580_v15 = vsel %vm549_vm2, %v543_v10, 0.0 }
 0x20c   :  { %v507_v17 = vadd.f32 %v1059_v14, %v1380_v11  ;;  %v546_v19 = vmul.f32 %v1387_v16, %v523_v12  ;;  %v501_v20 = vpop.f32.mrb[15].mxu1  ;;  %581 = vadd.xlane.f32.xlu0 %v580_v15 }
 0x20d   :  { %v502_v21 = vadd.f32 %v1380_v11, %v501_v20  ;;  %v545_v22 = vmul.f32 %v1387_v16, %v522_v13  ;;  %v1244_v11 = vmov 0  }
 0x20e   :  { %v525_v23 = vmax.f32 %v507_v17, 0.0  ;;  %v589_v26 = vsel %vm549_vm2, %v546_v19, 0.0  ;;  %1079 = vset.pattern.permute.xlu1 %v1244_v11  ;;  %1080 = vset.pattern.permute.xlu0 %v1244_v11 }
 0x20f   :  { %584 = vadd.xlane.f32.xlu1 %v583_v18  ;;  %v524_v24 = vmax.f32 %v502_v21, 0.0  ;;  %v586_v25 = vsel %vm549_vm2, %v545_v22, 0.0 }
 0x210   :  { %v548_v27 = vmul.f32 %v1387_v16, %v525_v23  ;;  %587 = vadd.xlane.f32.xlu0 %v586_v25 }
 0x211   :  { %v547_v28 = vmul.f32 %v1387_v16, %v524_v24 }
 0x212   :  { %v595_v30 = vsel %vm549_vm2, %v548_v27, 0.0 }
 0x213   :  { %590 = vadd.xlane.f32.xlu1 %v589_v26  ;;  %v592_v29 = vsel %vm549_vm2, %v547_v28, 0.0 }
 0x214   :  { %593 = vadd.xlane.f32.xlu0 %v592_v29 }
 0x217   :  { %596 = vadd.xlane.f32.xlu1 %v595_v30 }
 0x284   :  { %v555_v32 = vpop.xlane.xlu0 %554 }
 0x285   :  { %v606_v33 = vadd.f32 %v1435_v31, %v555_v32 }
 0x287   :  { %v947_v34 = vmul.f32 -1.442695, %v606_v33 }
 0x288   :  { %v561_v35 = vpop.xlane.xlu1 %560  ;;  %v552_v36 = vpop.xlane.xlu0 %551 }
 0x289   :  { %1081 = vpow2.f32 %v947_v34  ;;  %v608_v16 = vadd.f32 %v1435_v31, %v561_v35  ;;  %v605_v37 = vadd.f32 %v1435_v31, %v552_v36 }
 0x28b   :  { %v949_v38 = vmul.f32 -1.442695, %v608_v16  ;;  %v946_v39 = vmul.f32 -1.442695, %v605_v37 }
 0x28c   :  { %v558_v40 = vpop.xlane.xlu1 %557 }
 0x28d   :  { %1083 = vpow2.f32 %v949_v38  ;;  %v607_v41 = vadd.f32 %v1435_v31, %v558_v40  ;;  %v564_v42 = vpop.xlane.xlu0 %563 }
 0x28e   :  { %1085 = vpow2.f32 %v946_v39  ;;  %v609_v43 = vadd.f32 %v1435_v31, %v564_v42 }
 0x28f   :  { %v948_v44 = vmul.f32 -1.442695, %v607_v41 }
 0x290   :  { %v950_v45 = vmul.f32 -1.442695, %v609_v43  ;;  %v567_v46 = vpop.xlane.xlu1 %566 }
 0x291   :  { %1087 = vpow2.f32 %v948_v44  ;;  %v610_v47 = vadd.f32 %v1435_v31, %v567_v46  ;;  %v570_v48 = vpop.xlane.xlu0 %569 }
 0x292   :  { %v611_v49 = vadd.f32 %v1435_v31, %v570_v48  ;;  %1089 = vpow2.f32 %v950_v45 }
 0x293   :  { %v1082_v50 = vpop.eup %1081  ;;  %v951_v51 = vmul.f32 -1.442695, %v610_v47 }
 0x294   :  { %v670_v52 = vadd.f32 1.0, %v1082_v50  ;;  %v573_v53 = vpop.xlane.xlu1 %572  ;;  %v952_v54 = vmul.f32 -1.442695, %v611_v49 }
 0x295   :  { %1091 = vpow2.f32 %v951_v51  ;;  %v612_v55 = vadd.f32 %v1435_v31, %v573_v53  ;;  %v576_v56 = vpop.xlane.xlu0 %575 }
 0x296   :  { %1093 = vrcp.f32 %v670_v52  ;;  %v613_v62 = vadd.f32 %v1435_v31, %v576_v56 }
 0x297   :  { %v1084_v57 = vpop.eup %1083  ;;  %v953_v58 = vmul.f32 -1.442695, %v612_v55  ;;  %1095 = vpow2.f32 %v952_v54 }
 0x298   :  { %v1086_v59 = vpop.eup %1085  ;;  %v672_v60 = vadd.f32 1.0, %v1084_v57  ;;  %v579_v61 = vpop.xlane.xlu1 %578  ;;  %v954_v6 = vmul.f32 -1.442695, %v613_v62 }
 0x299   :  { %v669_v63 = vadd.f32 1.0, %v1086_v59  ;;  %1097 = vpow2.f32 %v953_v58  ;;  %v614_v0 = vadd.f32 %v1435_v31, %v579_v61  ;;  %v582_v1 = vpop.xlane.xlu0 %581 }
 0x29a   :  { %1099 = vrcp.f32 %v672_v60  ;;  %v615_v7 = vadd.f32 %v1435_v31, %v582_v1 }
 0x29b   :  { %v1088_v2 = vpop.eup %1087  ;;  %1101 = vrcp.f32 %v669_v63  ;;  %v955_v3 = vmul.f32 -1.442695, %v614_v0  ;;  %v781_v63 = vlaneseq }
 0x29c   :  { %v671_v4 = vadd.f32 1.0, %v1088_v2  ;;  %v585_v5 = vpop.xlane.xlu1 %584  ;;  %v1090_v10 = vpop.eup %1089  ;;  %v956_v18 = vmul.f32 -1.442695, %v615_v7 }
 0x29d   :  { %1103 = vpow2.f32 %v955_v3  ;;  %v616_v8 = vadd.f32 %v1435_v31, %v585_v5  ;;  %v588_v9 = vpop.xlane.xlu0 %587  ;;  %v673_v22 = vadd.f32 1.0, %v1090_v10  ;;  %v1453_v1 = vand.u32 127, %v781_v63 }
 0x29e   :  { %1105 = vrcp.f32 %v671_v4  ;;  %v617_v19 = vadd.f32 %v1435_v31, %v588_v9  ;;  %v1456_v4 = vshrl.u32 %v781_v63, 7 }
 0x29f   :  { %v1092_v12 = vpop.eup %1091  ;;  %v957_v13 = vmul.f32 -1.442695, %v616_v8  ;;  %1107 = vpow2.f32 %v954_v6  ;;  %v794_v3 = vadd.s32 4294967280, %v1453_v1  ;;  %v787_v5 = vadd.s32 4294967288, %v1453_v1 }
 0x2a0   :  { %v1094_v14 = vpop.eup %1093  ;;  %v674_v15 = vadd.f32 1.0, %v1092_v12  ;;  %v591_v17 = vpop.xlane.xlu1 %590  ;;  %v958_v28 = vmul.f32 -1.442695, %v617_v19  ;;  %v785_v7 = vsub.s32 %v1453_v1, %v1456_v4  ;;  %v808_v10 = vadd.s32 4294967264, %v1453_v1 }
 0x2a1   :  { %1109 = vpow2.f32 %v957_v13  ;;  %v618_v20 = vadd.f32 %v1435_v31, %v591_v17  ;;  %737 = vperm.xlu1 %1079, %v1094_v14   ;;  %v1096_v21 = vpop.eup %1095  ;;  %v594_v23 = vpop.xlane.xlu0 %593  ;;  %v797_v9 = vsub.s32 %v794_v3, %v1456_v4  ;;  %v790_v12 = vsub.s32 %v787_v5, %v1456_v4 }
 0x2a2   :  { %1111 = vrcp.f32 %v674_v15  ;;  %v619_v32 = vadd.f32 %v1435_v31, %v594_v23  ;;  %v675_v36 = vadd.f32 1.0, %v1096_v21  ;;  %v801_v13 = vadd.s32 4294967272, %v1453_v1 }
 0x2a3   :  { %v1098_v24 = vpop.eup %1097  ;;  %v959_v25 = vmul.f32 -1.442695, %v618_v20  ;;  %1113 = vpow2.f32 %v956_v18  ;;  %v811_v18 = vsub.s32 %v808_v10, %v1456_v4  ;;  %v815_v21 = vadd.s32 4294967256, %v1453_v1 }
 0x2a4   :  { %v1100_v26 = vpop.eup %1099  ;;  %v597_v27 = vpop.xlane.xlu1 %596  ;;  %v676_v30 = vadd.f32 1.0, %v1098_v24  ;;  %v960_v37 = vmul.f32 -1.442695, %v619_v32  ;;  %v804_v20 = vsub.s32 %v801_v13, %v1456_v4  ;;  %v822_v23 = vadd.s32 4294967248, %v1453_v1 }
 0x2a5   :  { %v1102_v29 = vpop.eup %1101  ;;  %1115 = vpow2.f32 %v959_v25  ;;  %v620_v11 = vadd.f32 %v1435_v31, %v597_v27  ;;  %743 = vperm.xlu1 %1079, %v1100_v26  }
 0x2a6   :  { %1117 = vrcp.f32 %v673_v22  ;;  %734 = vperm.xlu0 %1080, %v1102_v29   ;;  %v829_v29 = vadd.s32 4294967240, %v1453_v1  ;;  %v825_v32 = vsub.s32 %v822_v23, %v1456_v4 }
 0x2a7   :  { %v1104_v33 = vpop.eup %1103  ;;  %v961_v34 = vmul.f32 -1.442695, %v620_v11  ;;  %1119 = vpow2.f32 %v958_v28  ;;  %v818_v28 = vsub.s32 %v815_v21, %v1456_v4 }
 0x2a8   :  { %v1106_v35 = vpop.eup %1105  ;;  %v678_v16 = vadd.f32 1.0, %v1104_v33  ;;  %1121 = vrcp.f32 %v676_v30  ;;  %v836_v33 = vadd.s32 4294967232, %v1453_v1 }
 0x2a9   :  { %740 = vperm.xlu1 %1079, %v1106_v35   ;;  %v1108_v38 = vpop.eup %1107 }
 0x2aa   :  { %1123 = vrcp.f32 %v678_v16  ;;  %v677_v42 = vadd.f32 1.0, %v1108_v38  ;;  %v832_v16 = vsub.s32 %v829_v29, %v1456_v4 }
 0x2ab   :  { %v1110_v39 = vpop.eup %1109  ;;  %1125 = vpow2.f32 %v961_v34 }
 0x2ac   :  { %v1112_v40 = vpop.eup %1111  ;;  %1127 = vrcp.f32 %v675_v36  ;;  %v680_v41 = vadd.f32 1.0, %v1110_v39 }
 0x2ad   :  { %1129 = vpow2.f32 %v960_v37  ;;  %749 = vperm.xlu1 %1079, %v1112_v40   ;;  %v1114_v31 = vpop.eup %1113  ;;  %v843_v37 = vadd.s32 4294967224, %v1453_v1  ;;  %v839_v40 = vsub.s32 %v836_v33, %v1456_v4 }
 0x2ae   :  { %1131 = vrcp.f32 %v680_v41  ;;  %v679_v47 = vadd.f32 1.0, %v1114_v31  ;;  %v850_v41 = vadd.s32 4294967216, %v1453_v1 }
 0x2af   :  { %v1116_v43 = vpop.eup %1115  ;;  %1133 = vrcp.f32 %v677_v42 }
 0x2b0   :  { %v1118_v44 = vpop.eup %1117  ;;  %v682_v45 = vadd.f32 1.0, %v1116_v43 }
 0x2b1   :  { %746 = vperm.xlu1 %1079, %v1118_v44   ;;  %v1120_v46 = vpop.eup %1119 }
 0x2b2   :  { %1135 = vrcp.f32 %v682_v45  ;;  %v1122_v48 = vpop.eup %1121  ;;  %v681_v53 = vadd.f32 1.0, %v1120_v46  ;;  %v846_v45 = vsub.s32 %v843_v37, %v1456_v4  ;;  %v857_v46 = vadd.s32 4294967208, %v1453_v1 }
 0x2b3   :  { %1137 = vrcp.f32 %v679_v47 }
 0x2b4   :  { %v1124_v49 = vpop.eup %1123 }
 0x2b5   :  { %v1126_v50 = vpop.eup %1125  ;;  %761 = vperm.xlu0 %1080, %v1124_v49   ;;  %755 = vperm.xlu1 %1079, %v1122_v48   ;;  %v853_v49 = vsub.s32 %v850_v41, %v1456_v4 }
 0x2b6   :  { %v1128_v51 = vpop.eup %1127  ;;  %v684_v52 = vadd.f32 1.0, %v1126_v50  ;;  %v864_v50 = vadd.s32 4294967200, %v1453_v1 }
 0x2b7   :  { %v1130_v54 = vpop.eup %1129 }
 0x2b8   :  { %v1132_v55 = vpop.eup %1131  ;;  %1139 = vrcp.f32 %v684_v52  ;;  %v683_v56 = vadd.f32 1.0, %v1130_v54  ;;  %v860_v54 = vsub.s32 %v857_v46, %v1456_v4 }
 0x2b9   :  { %767 = vperm.xlu0 %1080, %v1132_v55   ;;  %752 = vperm.xlu1 %1079, %v1128_v51   ;;  %1141 = vrcp.f32 %v681_v53  ;;  %v1134_v57 = vpop.eup %1133  ;;  %v871_v55 = vadd.s32 4294967192, %v1453_v1 }
 0x2ba   :  { %1143 = vrcp.f32 %v683_v56 }
 0x2bc   :  { %v1136_v58 = vpop.eup %1135 }
 0x2bd   :  { %773 = vperm.xlu0 %1080, %v1136_v58   ;;  %758 = vperm.xlu1 %1079, %v1134_v57   ;;  %v1138_v59 = vpop.eup %1137 }
 0x2c1   :  { %764 = vperm.xlu1 %1079, %v1138_v59   ;;  %v867_v59 = vsub.s32 %v864_v50, %v1456_v4 }
 0x2c2   :  { %v1140_v60 = vpop.eup %1139 }
 0x2c3   :  { %779 = vperm.xlu0 %1080, %v1140_v60   ;;  %v1142_v61 = vpop.eup %1141  ;;  %v878_v60 = vadd.s32 4294967184, %v1453_v1 }
 0x2c4   :  { %v1144_v62 = vpop.eup %1143 }
 0x2c5   :  { %770 = vperm.xlu1 %1079, %v1142_v61  }
 0x2c9   :  { %776 = vperm.xlu1 %1079, %v1144_v62   ;;  %v885_v62 = vadd.s32 4294967176, %v1453_v1 }
 0x320   :  { %v738_v0 = vpop.permute.xlu1 %737 }
 0x321   :  { %v791_v19 = vrot.slane %v738_v0, %v790_v12 }
 0x324   :  { %v744_v2 = vpop.permute.xlu1 %743 }
 0x325   :  { %v735_v8 = vpop.permute.xlu0 %734  ;;  %v805_v27 = vrot.slane %v744_v2, %v804_v20  ;;  %v874_v2 = vsub.s32 %v871_v55, %v1456_v4 }
 0x326   :  { %v786_v15 = vrot.slane %v735_v8, %v785_v7  ;;  %v888_v7 = vsub.s32 %v885_v62, %v1456_v4 }
 0x328   :  { %v741_v6 = vpop.permute.xlu1 %740  ;;  %v793_v24 = vsel %vm792_vm3, %v791_v19, %v786_v15 }
 0x329   :  { %v798_v17 = vrot.slane %v741_v6, %v797_v9  ;;  %v881_v6 = vsub.s32 %v878_v60, %v1456_v4 }
 0x32b   :  { %v800_v25 = vsel %vm799_vm4, %v798_v17, %v793_v24 }
 0x32c   :  { %v750_v14 = vpop.permute.xlu1 %749  ;;  %v807_v34 = vsel %vm806_vm5, %v805_v27, %v800_v25 }
 0x32d   :  { %v819_v36 = vrot.slane %v750_v14, %v818_v28 }
 0x330   :  { %v747_v22 = vpop.permute.xlu1 %746 }
 0x331   :  { %v812_v26 = vrot.slane %v747_v22, %v811_v18 }
 0x333   :  { %v814_v35 = vsel %vm813_vm6, %v812_v26, %v807_v34 }
 0x334   :  { %v756_v30 = vpop.permute.xlu1 %755  ;;  %v762_v11 = vpop.permute.xlu0 %761  ;;  %v821_v42 = vsel %vm820_vm7, %v819_v36, %v814_v35 }
 0x335   :  { %v833_v44 = vrot.slane %v756_v30, %v832_v16  ;;  %v847_v53 = vrot.slane %v762_v11, %v846_v45 }
 0x338   :  { %v753_v38 = vpop.permute.xlu1 %752  ;;  %v768_v43 = vpop.permute.xlu0 %767 }
 0x339   :  { %v826_v39 = vrot.slane %v753_v38, %v825_v32  ;;  %v861_v0 = vrot.slane %v768_v43, %v860_v54 }
 0x33b   :  { %v828_v31 = vsel %vm827_vm8, %v826_v39, %v821_v42 }
 0x33c   :  { %v759_v47 = vpop.permute.xlu1 %758  ;;  %v835_v51 = vsel %vm834_vm9, %v833_v44, %v828_v31  ;;  %v774_v57 = vpop.permute.xlu0 %773 }
 0x33d   :  { %v840_v48 = vrot.slane %v759_v47, %v839_v40  ;;  %v875_v12 = vrot.slane %v774_v57, %v874_v2 }
 0x33f   :  { %v842_v52 = vsel %vm841_vm10, %v840_v48, %v835_v51 }
 0x340   :  { %v765_v56 = vpop.permute.xlu1 %764  ;;  %v849_v61 = vsel %vm848_vm11, %v847_v53, %v842_v52 }
 0x341   :  { %v854_v58 = vrot.slane %v765_v56, %v853_v49 }
 0x342   :  { %v780_v9 = vpop.permute.xlu0 %779 }
 0x343   :  { %v856_v63 = vsel %vm855_vm12, %v854_v58, %v849_v61  ;;  %v889_v14 = vrot.slane %v780_v9, %v888_v7 }
 0x344   :  { %v771_v3 = vpop.permute.xlu1 %770  ;;  %v863_v8 = vsel %vm862_vm13, %v861_v0, %v856_v63 }
 0x345   :  { %v868_v5 = vrot.slane %v771_v3, %v867_v59 }
 0x347   :  { %v870_v10 = vsel %vm869_vm14, %v868_v5, %v863_v8 }
 0x348   :  { %v777_v13 = vpop.permute.xlu1 %776  ;;  %v877_v15 = vsel %vm876_vm15, %v875_v12, %v870_v10 }
 0x349   :  { %v882_v1 = vrot.slane %v777_v13, %v881_v6 }
 0x34b   :  { %v884_v17 = vsel %vm883_vm0, %v882_v1, %v877_v15 }
 0x34c   :  { %v891_v18 = vsel %vm890_vm1, %v889_v14, %v884_v17 }
 0x34d   :  { %893 = vst [vmem:[#allocation9] sm:$0x1] %v891_v18 }
 0x34e   :  { %1222 = shalt.err (!%p1219_p0)
}
 0x34f   :  { %s1223_s23 = scalar_lea.hbm %s1508_s7, 16 }
 0x350   :  { %p1224_p1 = scmp.ne.s32.totalorder %s1508_s7, %s1223_s23  ;;  %p1227_p2 = scmp.lt.u32.totalorder %s1223_s23, %s1508_s7 }
 0x352   :  { %p1229_p3 = pnand %p1227_p2, %p1224_p1 }
 0x354   :  { %1232 = shalt.err (!%p1229_p3)
}
 0x355   :  { %903 = dma.vmem_to_hbm [thread:$0]  %s901_s5, 16, %s1508_s7, [#allocation5]  }
 0x356   :  { %1237 = dma.done.wait [#allocation5], 16  }
 0x357   :  { %1238 = vsyncadd [#allocation5], 4294967280 }
 0x358   :  { %907 = vsyncpa [#allocation4], 1 }
 0x359   :  { %908 = vsyncpa [#allocation7], 1 }
 0x35a   :  { %909 = vsyncpa [#allocation5], 1 }

</bundles_post_ra>
